<compile_context>
chip_gen: v7x
topology: tpu7x:2x2x1
jax: 0.10.0
libtpu: 0.0.40
codegen_flags: <defaults>
</compile_context>

<pallas_src>
import math

import numpy as np
import jax
import jax.numpy as jnp
from jax.experimental import pallas as pl
from jax.experimental.pallas import tpu as pltpu


# --------------------------------------------------------------------------
# static (trace-time, numpy/float64) index + weight construction
# --------------------------------------------------------------------------
def _round_up(n: int, m: int) -> int:
    return ((n + m - 1) // m) * m


def _sublane_multiple(dtype) -> int:
    # packed sublane tile: 8 for f32, 16 for bf16, 32 for int8/fp8
    return max(8, 32 // jnp.dtype(dtype).itemsize)


def _padded_bytes(rows: int, cols: int, dtype) -> int:
    sub = _sublane_multiple(dtype)
    return _round_up(rows, sub) * _round_up(cols, 128) * jnp.dtype(dtype).itemsize


def _nearest_src_indices(in_size: int, out_size: int) -> np.ndarray:
    """Nearest-neighbour source indices, computed statically in float64.

    src = min(floor(dst * in / out), in - 1)  (legacy PyTorch nearest rule;
    identical to floor(dst / scale) whenever out == in * scale exactly).
    """
    # TODO(synk): modern PyTorch with a non-recomputed scale_factor uses
    #             src = floor(dst / scale); differs only when in*scale is not
    #             an integer.
    dst = np.arange(out_size, dtype=np.float64)
    src = np.floor(dst * (float(in_size) / float(out_size))).astype(np.int64)
    return np.clip(src, 0, in_size - 1)


def _one_hot_np(idx: np.ndarray, depth: int) -> np.ndarray:
    m = np.zeros((idx.shape[0], depth), dtype=np.float32)
    m[np.arange(idx.shape[0]), idx] = 1.0
    return m


def _vmem_limits():
    """Generation-aware (scratch budget, scoped vmem limit) in bytes."""
    phys = 64 << 20                       # conservative default (v7x-sized)
    try:
        phys = int(pltpu.get_tpu_info().vmem_capacity_bytes)
    except Exception:
        pass
    if phys >= (96 << 20):                # v5e / v6e: 128 MiB physical
        return 48 << 20, 64 << 20
    return 20 << 20, 36 << 20             # v7x: 64 MiB physical


# --------------------------------------------------------------------------
# kernels
# --------------------------------------------------------------------------
def _upsample_fused_kernel(x_ref, s_ref, o_ref):
    # x_ref: (bc, H*W) plane block; s_ref: (H*W, tN) one-hot Kronecker
    # selection; o_ref: (bc, tN).  Weights are 0/1 so the MXU matmul is an
    # exact copy; input and output last dims are both lane-dense.
    out = jnp.dot(x_ref[...], s_ref[...], preferred_element_type=jnp.float32)
    o_ref[...] = out.astype(o_ref.dtype)


def _upsample_separable_kernel(x_ref, sh_ref, swt_ref, o_ref):
    # Fallback for large planes (Kronecker matrix would not fit VMEM).
    # x_ref: (1, H, W); sh_ref: (Ho, H); swt_ref: (W, Wo); o_ref: (1, Ho, Wo).
    x = x_ref[0]                                                   # (H, W)
    rows = jnp.dot(sh_ref[...], x,
                   preferred_element_type=jnp.float32).astype(x.dtype)  # (Ho, W)
    out = jnp.dot(rows, swt_ref[...], preferred_element_type=jnp.float32)
    o_ref[0] = out.astype(o_ref.dtype)


# --------------------------------------------------------------------------
# block sizing
# --------------------------------------------------------------------------
def _pick_plane_block_fused(nc, hw, howo, x_dtype, w_dtype, budget_bytes):
    x_item = jnp.dtype(x_dtype).itemsize
    hw_p = _round_up(hw, 128)
    howo_p = _round_up(howo, 128)
    # grid-invariant weight, conservatively counted double-buffered
    fixed = 2 * _padded_bytes(hw, howo, w_dtype)
    avail = max(budget_bytes - fixed, 1 << 20)
    per_plane = (2 * hw_p * x_item        # double-buffered input rows
                 + 2 * howo_p * x_item    # double-buffered output rows
                 + howo_p * 4)            # f32 matmul accumulator row
    return max(1, min(nc, int(avail // per_plane)))


# --------------------------------------------------------------------------
# wrapper
# --------------------------------------------------------------------------
def upsample_nearest(x: jax.Array, scale: float) -> jax.Array:
    """Pallas equivalent of _UpsampleNearest.forward for 4-D (NCHW) input."""
    assert x.ndim == 4, "only the 4-D (NCHW) nearest path is implemented"
    N, C, H, W = x.shape
    Ho = int(math.floor(H * float(scale)))
    Wo = int(math.floor(W * float(scale)))
    assert Ho > 0 and Wo > 0

    rh = _nearest_src_indices(H, Ho)                 # (Ho,) static int64
    rw = _nearest_src_indices(W, Wo)                 # (Wo,) static int64
    sh_np = _one_hot_np(rh, H)                       # (Ho, H)
    sw_np = _one_hot_np(rw, W)                       # (Wo, W)

    wdtype = jnp.bfloat16 if x.dtype == jnp.bfloat16 else jnp.float32
    w_item = jnp.dtype(wdtype).itemsize
    x_item = jnp.dtype(x.dtype).itemsize
    nc, HW, HoWo = N * C, H * W, Ho * Wo
    budget, vmem_limit = _vmem_limits()
    sub = _sublane_multiple(x.dtype)

    if _padded_bytes(HW, HoWo, wdtype) <= (4 << 20):
        # ---- fused path: one lane-dense matmul (nc, H*W) @ (H*W, Ho*Wo) ----
        s = jnp.asarray(np.kron(sh_np.T, sw_np.T), dtype=wdtype)  # (HW, HoWo)
        xf = x.reshape(nc, HW)                       # free row-major reshape

        bc = _pick_plane_block_fused(nc, HW, HoWo, x.dtype, wdtype, budget)
        # cap so the plane axis alone gives >= ~4 grid steps when nc allows it
        bc = min(bc, max(sub, _round_up(pl.cdiv(nc, 4), sub)), nc)
        if bc < nc:                                  # keep sublane-tile aligned
            bc = max(sub, (bc // sub) * sub)
        bc = min(bc, nc)
        n_plane_steps = pl.cdiv(nc, bc)

        # if the plane axis gives too few steps, also split the output lane
        # axis (tn stays a multiple of 128 -> every block remains lane-dense)
        tn = HoWo
        if n_plane_steps < 4 and HoWo % 128 == 0 and HoWo > 128:
            want = pl.cdiv(4, n_plane_steps)
            tn = min(HoWo, max(128, _round_up(pl.cdiv(HoWo, want), 128)))
        grid = (n_plane_steps, pl.cdiv(HoWo, tn))

        out = pl.pallas_call(
            _upsample_fused_kernel,
            out_shape=jax.ShapeDtypeStruct((nc, HoWo), x.dtype),
            grid=grid,
            in_specs=[
                pl.BlockSpec((bc, HW), lambda b, j: (b, 0)),
                pl.BlockSpec((HW, tn), lambda b, j: (0, j)),   # weight slices
            ],
            out_specs=pl.BlockSpec((bc, tn), lambda b, j: (b, j)),
            compiler_params=pltpu.CompilerParams(
                dimension_semantics=("parallel", "parallel"),
                vmem_limit_bytes=vmem_limit),
            cost_estimate=pl.CostEstimate(
                flops=2 * nc * HW * HoWo,
                transcendentals=0,
                bytes_accessed=nc * (HW + HoWo) * x_item + HW * HoWo * w_item),
        )(xf, s)
        return out.reshape(N, C, Ho, Wo)

    # ---- separable fallback (large planes: W, Wo >= 128 -> lane-dense) -----
    # TODO(synk): tile Ho (slice sh rows per block) for very large planes on
    #             v7x; one plane per grid step is enough for FRVSR-sized inputs.
    sh = jnp.asarray(sh_np, dtype=wdtype)            # (Ho, H)
    swt = jnp.asarray(sw_np.T, dtype=wdtype)         # (W, Wo) pre-transposed
    xf = x.reshape(nc, H, W)
    out = pl.pallas_call(
        _upsample_separable_kernel,
        out_shape=jax.ShapeDtypeStruct((nc, Ho, Wo), x.dtype),
        grid=(nc,),
        in_specs=[
            pl.BlockSpec((1, H, W), lambda b: (b, 0, 0)),
            pl.BlockSpec((Ho, H), lambda b: (0, 0)),
            pl.BlockSpec((W, Wo), lambda b: (0, 0)),
        ],
        out_specs=pl.BlockSpec((1, Ho, Wo), lambda b: (b, 0, 0)),
        compiler_params=pltpu.CompilerParams(
            dimension_semantics=("parallel",),
            vmem_limit_bytes=vmem_limit),
        cost_estimate=pl.CostEstimate(
            flops=2 * nc * (Ho * H * W + Ho * W * Wo),
            transcendentals=0,
            bytes_accessed=nc * (H * W + Ho * Wo) * x_item
            + (Ho * H + W * Wo) * w_item),
    )(xf, sh, swt)
    return out.reshape(N, C, Ho, Wo)


# --------------------------------------------------------------------------
# self-test
# --------------------------------------------------------------------------
if __name__ == "__main__":
    key = jax.random.PRNGKey(0)

    def _check(n, c, h, w, scale, dtype=jnp.float32):
        k = jax.random.fold_in(key, n * 1009 + c * 101 + h)
        x = jax.random.normal(k, (n, c, h, w), dtype=dtype)
        y = jax.block_until_ready(upsample_nearest(x, scale))
        ho, wo = int(math.floor(h * scale)), int(math.floor(w * scale))
        assert y.shape == (n, c, ho, wo), (y.shape, (n, c, ho, wo))
        assert y.dtype == x.dtype
        rh = _nearest_src_indices(h, ho)
        rw = _nearest_src_indices(w, wo)
        ref = x[:, :, rh, :][:, :, :, rw]
        assert jnp.array_equal(y, ref), "mismatch vs nearest reference"

    _check(2, 4, 16, 16, 2.0)   # main shape (nc=8): column-split grid
    _check(2, 5, 16, 16, 2.0)   # nc=10: exercises the partial plane block
    _check(1, 3, 16, 16, 1.5)   # non-dyadic scale, nc below the sublane tile
    print("KERNEL_OK")
</pallas_src>

<mosaic_0001>
module attributes {stable_mosaic.version = 11 : i64} {
  func.func @_upsample_fused_kernel(%arg0: i32, %arg1: i32, %arg2: memref<8x256xf32, #tpu.memory_space<vmem>>, %arg3: memref<256x256xf32, #tpu.memory_space<vmem>>, %arg4: memref<8x256xf32, #tpu.memory_space<vmem>>) attributes {dimension_semantics = [#tpu.dimension_semantics<parallel>, #tpu.dimension_semantics<parallel>], iteration_bounds = array<i64: 1, 4>, scalar_prefetch = 0 : i64, scratch_operands = 0 : i64, tpu.core_type = #tpu.core_type<tc>, window_params = [{transform_indices = @transform_0, window_bounds = array<i64: 8, 256>}, {transform_indices = @transform_1, window_bounds = array<i64: 256, 256>}, {transform_indices = @transform_2, window_bounds = array<i64: 8, 256>}]} {
    %c0 = arith.constant 0 : index
    %c0_0 = arith.constant 0 : index
    %0 = vector.load %arg2[%c0, %c0_0] : memref<8x256xf32, #tpu.memory_space<vmem>>, vector<8x256xf32>
    %c0_1 = arith.constant 0 : index
    %c0_2 = arith.constant 0 : index
    %1 = vector.load %arg3[%c0_1, %c0_2] : memref<256x256xf32, #tpu.memory_space<vmem>>, vector<256x256xf32>
    %cst = arith.constant dense<0.000000e+00> : vector<8x256xf32>
    %2 = tpu.matmul %0, %1, %cst {dimension_numbers = #tpu.dot_dimension_numbers<[1], [0], [0], [1], [0, 0, 1, 1], [], []>} : vector<8x256xf32>, vector<256x256xf32>, vector<8x256xf32> -> vector<8x256xf32>
    %c0_3 = arith.constant 0 : index
    %c0_4 = arith.constant 0 : index
    %3 = vector.load %arg4[%c0_3, %c0_4] : memref<8x256xf32, #tpu.memory_space<vmem>>, vector<8x256xf32>
    tpu.vector_store %arg4[%c0_3, %c0_4], %2 {strides = array<i32>} : memref<8x256xf32, #tpu.memory_space<vmem>>, vector<8x256xf32>,
    return
  }
  func.func @transform_0(%arg0: i32, %arg1: i32) -> (i32, i32) {
    %c0_i32 = arith.constant 0 : i32
    %c0_i32_0 = arith.constant 0 : i32
    return %arg0, %c0_i32 : i32, i32
  }
  func.func @transform_1(%arg0: i32, %arg1: i32) -> (i32, i32) {
    %c0_i32 = arith.constant 0 : i32
    %c0_i32_0 = arith.constant 0 : i32
    return %c0_i32, %arg1 : i32, i32
  }
  func.func @transform_2(%arg0: i32, %arg1: i32) -> (i32, i32) {
    %c0_i32 = arith.constant 0 : i32
    return %arg0, %arg1 : i32, i32
  }
}

</mosaic_0001>

<bundles_post_ra>
// kernel: tpu_custom_call.1
= control target key start
LH: loop header
LB: loop body
LE: loop exit
PB: predicated region body
PF: predicated region fallthrough
CT: control target
= control target key end

     0   :  { %7 = vsyncpa [#allocation3], 0  ;;  %s1060_s0 = inlined_call_operand.hbm [shape: f32[8,256], index: 0, kind: input, shape index: {}]   ;;  %s1061_s1 = inlined_call_operand.hbm [shape: f32[256,1024], index: 1, kind: input, shape index: {}]   ;;  %s1062_s2 = inlined_call_operand.hbm [shape: f32[8,1024], index: 2, kind: output, shape index: {}]  }
   0x1   :  { %8 = vsyncpa [#allocation6], 0 }
   0x2   :  { %10 = vsyncpa [#allocation6 + $0x1], 0 }
   0x3   :  { %11 = vsyncpa [#allocation4], 0 }
   0x4   :  { %13 = vsyncpa [#allocation4 + $0x1], 0  ;;  %s776_s9 = smov 0   ;;  %s778_s10 = smov 0  }
   0x5   :  { %s780_s11 = smov 0   ;;  %s782_s12 = smov 0  }
   0x6   :  { %s784_s13 = smov 0   ;;  %s786_s14 = smov 0  }
   0x7 LB: > { %s450_s15 = sadd.s32 4294967295, %s753_s14   ;;  %s451_s16 = sadd.s32 4294967294, %s753_s14   ;;  %s753_s14 = sphi %s786_s14, %s19_s14   ;;  %s749_s13 = sphi %s784_s13, %s1089_s13   ;;  %s745_s12 = sphi %s782_s12, %s1088_s12   ;;  %s741_s11 = sphi %s780_s11, %s1087_s11   ;;  %s737_s10 = sphi %s778_s10, %s1086_s10   ;;  %s733_s9 = sphi %s776_s9, %s1085_s9  }
   0x8   : > { %s64_s17 = sadd.s32 1, %s741_s11  ;;  %p71_p0 = scmp.ne.s32.totalorder %s741_s11, %s737_s10 }
   0x9   : > { %p72_p1 = scmp.eq.s32.totalorder %s753_s14, 0  ;;  %p77_p2 = scmp.ne.s32.totalorder %s737_s10, %s733_s9 }
   0xa   : > { %p814_p3 = scmp.eq.s32.totalorder %s450_s15, 0  ;;  %p103_p4 = scmp.eq.s32.totalorder %s450_s15, 3 }
   0xb   : > { %p818_p5 = por %p72_p1, %p71_p0  ;;  %p109_p6 = scmp.eq.s32.totalorder %s451_s16, 3 }
   0xc   : > { %s1069_s18 = scalar_select %p814_p3, 1, 0 }
   0xd   : > { %p824_p7 = por %p814_p3, %p77_p2  ;;  %p828_p8 = por %p103_p4, %p71_p0 }
   0xe   : > { %p832_p9 = por %p109_p6, %p77_p2  ;;  %p452_p10 = scmp.ge.s32.totalorder %s753_s14, 1 }
   0xf   : > { %s1071_s20 = scalar_select %p824_p7, 1, 0 }
  0x10   : > { %s1072_s21 = scalar_select %p828_p8, 1, 0 }
  0x11   : > { %s1073_s22 = scalar_select %p832_p9, 1, 0 }
  0x12   : > { %p116_p11 = scmp.lt.s32.totalorder %s753_s14, 5  ;;  %s755_s24 = smov [#allocation2]  }
  0x13   : > { %s132_s25 = sshll.u32 %s755_s24, 4  ;;  %p554_p13 = scmp.lt.s32.totalorder %s753_s14, 4  ;;  %s133_s25 = int_to_ptr.vmem [resolvable:$true] %s132_s25 }
  0x14   : > { %p838_p12 = pnand %p452_p10, %p116_p11  ;;  %s28_s28 = sadd.s32 1, %s749_s13 }
  0x15   : > { %p847_p1 = pnand %p554_p13, %p818_p5  ;;  %p858_p4 = scmp.ge.s32.totalorder %s28_s28, 4 }
  0x16   : > { %s1074_s23 = scalar_select %p838_p12, 1, 0 }
  0x17   : > { %p541_p0 = pneg %p838_p12  ;;  %s143_s30 = sand.u32 1, %s741_s11  }
  0x18   : > { %s1075_s26 = scalar_select %p847_p1, 1, 0 }
  0x19   : > { %p853_p2 = pnand %p541_p0, %p814_p3  ;;  %s609_s5 = scalar_lea.hbm %s1060_s0, 256 }
  0x1a   : > { %s1077_s29 = scalar_select %p858_p4, 1, 0 }
  0x1b   : > { %p610_p5 = scmp.ne.s32.totalorder %s1060_s0, %s609_s5  ;;  %p611_p6 = pneg %p853_p2 }
  0x1c   : > { %p616_p13 = scmp.lt.u32.totalorder %s609_s5, %s1060_s0 }
  0x1d   : > { %p612_p10 = pnand %p611_p6, %p610_p5 }
  0x1f   : > { %p613_p11 = pneg %p612_p10 }
  0x21   : > { %p618_p0 = pnand %p616_p13, %p613_p11 }
  0x23   : > { %621 = shalt.err (!%p618_p0)
}
  0x24   : > { %s622_s16 = scalar_lea.vmem %s133_s25, 256  ;;  %p630_p3 = scmp.lt.s32.totalorder %s133_s25, %s133_s25 }
  0x25   : > { %p623_p9 = scmp.ne.s32.totalorder %s133_s25, %s622_s16  ;;  %p631_p12 = scmp.lt.s32.totalorder %s622_s16, %s622_s16 }
  0x27   : > { %p625_p8 = pnand %p623_p9, %p611_p6  ;;  %p632_p1 = por %p631_p12, %p630_p3 }
  0x29   : > { %p626_p7 = pneg %p625_p8 }
  0x2b   : > { %p633_p4 = pnand %p632_p1, %p626_p7 }
  0x2d   : > { %636 = shalt.err (!%p633_p4)
}
  0x2e   : > { %544 = dma.hbm_to_vmem [thread:$0]  (!%p853_p2), %s1060_s0, 256, %s133_s25, [#allocation3]  }
  0x2f   : > { %p1078_p9 = scmp.ne.s32.totalorder %s1077_s29, 0  ;;  %s455_s3 = sshll.u32 %s143_s30, 9 }
  0x30   : > { %s467_s5 = sshll.u32 %s749_s13, 8  ;;  %s147_s8 = scalar_lea.vmem [#allocation5], %s455_s3 }
  0x31   : > { %s1091_s28 = smov (%p1078_p9, %s28_s28), 0  ;;  %s889_s7 = scalar_lea.hbm %s1061_s1, %s467_s5 }
  0x32   : > { %s61_s4 = ssub.s32 %s749_s13, %s1091_s28  ;;  %s154_s15 = sshll.u32 %s147_s8, 4  ;;  %s896_s15 = int_to_ptr.vmem [resolvable:$true] %s154_s15 }
  0x33   : > { %p62_p3 = scmp.eq.s32.totalorder %s61_s4, 0  ;;  %s898_s29 = scalar_lea.sflag [#allocation6], %s143_s30 }
  0x34   : > { %s637_s16 = scalar_lea.hbm %s889_s7, 8192  ;;  %p1079_p8 = scmp.ne.s32.totalorder %s1075_s26, 0 }
  0x35   : > { %s894_s25 = scalar_select %p62_p3, %s741_s11, %s64_s17  }
  0x36   : > { %p638_p7 = scmp.ne.s32.totalorder %s889_s7, %s637_s16  ;;  %p639_p12 = pneg %p1079_p8 }
  0x37   : > { %s642_s3 = scalar_lea.hbm %s1061_s1, 32768  ;;  %p643_p4 = scmp.lt.u32.totalorder %s889_s7, %s1061_s1 }
  0x38   : > { %p640_p1 = pnand %p639_p12, %p638_p7  ;;  %p644_p5 = scmp.lt.u32.totalorder %s642_s3, %s637_s16 }
  0x39   : > { %p646_p10 = scmp.lt.u32.totalorder %s637_s16, %s889_s7 }
  0x3a   : > { %p641_p2 = pneg %p640_p1  ;;  %p645_p6 = por %p644_p5, %p643_p4 }
  0x3c   : > { %p647_p11 = por %p646_p10, %p645_p6 }
  0x3e   : > { %p648_p13 = pnand %p647_p11, %p641_p2 }
  0x40   : > { %651 = shalt.err (!%p648_p13)
}
  0x41   : > { %s652_s17 = scalar_lea.vmem %s896_s15, 8192  ;;  %s756_s30 = smov [#allocation5]  }
  0x42   : > { %p653_p0 = scmp.ne.s32.totalorder %s896_s15, %s652_s17  ;;  %s657_s27 = sshll.u32 %s756_s30, 4  ;;  %s658_s27 = int_to_ptr.vmem [resolvable:$false] %s657_s27 }
  0x43   : > { %s659_s6 = scalar_lea.vmem %s658_s27, 16384  ;;  %p660_p7 = scmp.lt.s32.totalorder %s896_s15, %s658_s27 }
  0x44   : > { %p655_p9 = pnand %p653_p0, %p639_p12  ;;  %p661_p1 = scmp.lt.s32.totalorder %s659_s6, %s652_s17 }
  0x46   : > { %p656_p3 = pneg %p655_p9  ;;  %p662_p4 = por %p661_p1, %p660_p7 }
  0x48   : > { %p663_p5 = pnand %p662_p4, %p656_p3 }
  0x4a   : > { %666 = shalt.err (!%p663_p5)
}
  0x4b   : > { %s757_s8 = smov 1024   ;;  %s758_s16 = smov 256  }
  0x4c   : > { %s759_s19 = smov 16   ;;  %p1080_p12 = scmp.ne.s32.totalorder %s1074_s23, 0 }
  0x4d   : > { %548 = dma.hbm_to_vmem [thread:$0]  (!%p1079_p8), %s889_s7, 8192, %s896_s15, %s898_s29, %s757_s8, %s758_s16, %s759_s19  }
  0x4e   : > { %166 = sbr.rel (%p1080_p12) target bundleno = 384 (0x180), region = 28  ;;  %p1081_p2 = scmp.ne.s32.totalorder (!%p1080_p12), %s1069_s18, 0 }
  0x55   : > { %720 = dma.done.wait (%p1081_p2), [#allocation3], 256  }
  0x56   : > { %722 = vsyncadd (%p1081_p2), [#allocation3], 4294967040  ;;  %s933_s24 = sand.u32 1, %s737_s10   ;;  %p1082_p8 = scmp.ne.s32.totalorder %s1071_s20, 0 }
  0x57   : > { %s460_s3 = sshll.u32 %s933_s24, 9  ;;  %s173_s4 = scalar_lea.sflag [#allocation6], %s933_s24 }
  0x58   : > { %s937_s5 = scalar_lea.vmem [#allocation5], %s460_s3 }
  0x59   : > { %724 = dma.done.wait (%p1082_p8), %s173_s4, 8192  }
  0x5a   : > { %726 = vsyncadd (%p1082_p8), %s173_s4, 4294959104  ;;  %v202_v0 = vld [vmem:[%s937_s5 + $0x8] sm:$0xff]  ;;  %v204_v1 = vld [vmem:[%s937_s5 + $0x18] sm:$0xff]  ;;  %s461_s18 = sshll.u32 %s933_s24, 4  ;;  %s468_s26 = sshll.u32 %s745_s12, 8 }
  0x5b   : > { %v201_v2 = vld [vmem:[%s937_s5] sm:$0xff]  ;;  %v469_v3 = vpack.c.bf16 %v204_v1, %v202_v0  ;;  %v203_v4 = vld [vmem:[%s937_s5 + $0x10] sm:$0xff]  ;;  %v206_v5 = vld [vmem:[%s937_s5 + $0x28] sm:$0xff]  ;;  %s196_s20 = scalar_lea.vmem [#allocation7], %s461_s18  ;;  %s1014_s29 = scalar_lea.hbm %s1062_s2, %s468_s26 }
  0x5c   : > { %v208_v6 = vld [vmem:[%s937_s5 + $0x38] sm:$0xff]  ;;  %v471_v7 = vpack.c.bf16 %v203_v4, %v201_v2  ;;  %v205_v9 = vld [vmem:[%s937_s5 + $0x20] sm:$0xff]  ;;  %v207_v10 = vld [vmem:[%s937_s5 + $0x30] sm:$0xff]  ;;  %s355_s23 = sshll.u32 %s196_s20, 4  ;;  %s339_s17 = scalar_lea.sflag [#allocation4], %s933_s24  ;;  %s1009_s23 = int_to_ptr.vmem [resolvable:$true] %s355_s23 }
  0x5d   : > { %v473_v8 = vpack.c.bf16 %v208_v6, %v206_v5  ;;  %v210_v11 = vld [vmem:[%s937_s5 + $0x48] sm:$0xff]  ;;  %470 = vmatprep.subr.bf16.mxu0 %v469_v3  ;;  %v212_v12 = vld [vmem:[%s937_s5 + $0x58] sm:$0xff]  ;;  %v475_v13 = vpack.c.bf16 %v207_v10, %v205_v9  ;;  %v209_v15 = vld [vmem:[%s937_s5 + $0x40] sm:$0xff]  ;;  %s667_s30 = scalar_lea.vmem %s1009_s23, 256  ;;  %p1083_p10 = scmp.ne.s32.totalorder %s1072_s21, 0 }
  0x5e   : > { %472 = vmatpush1.bf16.msra.mxu0 %v471_v7  ;;  %v477_v14 = vpack.c.bf16 %v212_v12, %v210_v11  ;;  %v211_v16 = vld [vmem:[%s937_s5 + $0x50] sm:$0xff]  ;;  %v214_v17 = vld [vmem:[%s937_s5 + $0x68] sm:$0xff]  ;;  %v216_v18 = vld [vmem:[%s937_s5 + $0x78] sm:$0xff]  ;;  %p668_p6 = scmp.ne.s32.totalorder %s1009_s23, %s667_s30  ;;  %s760_s12 = smov [#allocation7]  }
  0x5f   : > { %474 = vmatprep.subr.bf16.mxu0 %v473_v8  ;;  %v479_v19 = vpack.c.bf16 %v211_v16, %v209_v15  ;;  %v481_v20 = vpack.c.bf16 %v216_v18, %v214_v17  ;;  %v213_v21 = vld [vmem:[%s937_s5 + $0x60] sm:$0xff]  ;;  %v215_v22 = vld [vmem:[%s937_s5 + $0x70] sm:$0xff]  ;;  %v218_v23 = vld [vmem:[%s937_s5 + $0x88] sm:$0xff]  ;;  %s671_s27 = sshll.u32 %s760_s12, 4  ;;  %s672_s27 = int_to_ptr.vmem [resolvable:$false] %s671_s27 }
  0x60   : > { %v220_v24 = vld [vmem:[%s937_s5 + $0x98] sm:$0xff]  ;;  %v483_v25 = vpack.c.bf16 %v215_v22, %v213_v21  ;;  %v217_v27 = vld [vmem:[%s937_s5 + $0x80] sm:$0xff]  ;;  %v219_v28 = vld [vmem:[%s937_s5 + $0x90] sm:$0xff]  ;;  %p669_p11 = pnand %p668_p6, %p1083_p10  ;;  %s673_s6 = scalar_lea.vmem %s672_s27, 512 }
  0x61   : > { %v485_v26 = vpack.c.bf16 %v220_v24, %v218_v23  ;;  %v222_v29 = vld [vmem:[%s937_s5 + $0xa8] sm:$0xff]  ;;  %v224_v30 = vld [vmem:[%s937_s5 + $0xb8] sm:$0xff]  ;;  %v487_v31 = vpack.c.bf16 %v219_v28, %v217_v27  ;;  %v221_v33 = vld [vmem:[%s937_s5 + $0xa0] sm:$0xff]  ;;  %p674_p0 = scmp.lt.s32.totalorder %s1009_s23, %s672_s27  ;;  %p675_p9 = scmp.lt.s32.totalorder %s673_s6, %s667_s30 }
  0x62   : > { %476 = vmatpush1.bf16.msra.mxu0 %v475_v13  ;;  %v489_v32 = vpack.c.bf16 %v224_v30, %v222_v29  ;;  %v223_v34 = vld [vmem:[%s937_s5 + $0xb0] sm:$0xff]  ;;  %v226_v35 = vld [vmem:[%s937_s5 + $0xc8] sm:$0xff]  ;;  %v228_v36 = vld [vmem:[%s937_s5 + $0xd8] sm:$0xff]  ;;  %p670_p13 = pneg %p669_p11 }
  0x63   : > { %478 = vmatprep.subr.bf16.mxu0 %v477_v14  ;;  %v491_v37 = vpack.c.bf16 %v223_v34, %v221_v33  ;;  %v493_v38 = vpack.c.bf16 %v228_v36, %v226_v35  ;;  %v225_v39 = vld [vmem:[%s937_s5 + $0xc0] sm:$0xff]  ;;  %v227_v40 = vld [vmem:[%s937_s5 + $0xd0] sm:$0xff]  ;;  %v200_v41 = vld [vmem:[#allocation2 + $0x8] sm:$0xff]  ;;  %p676_p3 = por %p675_p9, %p674_p0 }
  0x64   : > { %v230_v42 = vld [vmem:[%s937_s5 + $0xe8] sm:$0xff]  ;;  %v232_v43 = vld [vmem:[%s937_s5 + $0xf8] sm:$0xff]  ;;  %329 = vmatprep.mubr.f32.mxu0 %v200_v41  ;;  %v495_v44 = vpack.c.bf16 %v227_v40, %v225_v39  ;;  %v229_v46 = vld [vmem:[%s937_s5 + $0xe0] sm:$0xff] }
  0x65   : > { %v497_v45 = vpack.c.bf16 %v232_v43, %v230_v42  ;;  %v231_v47 = vld [vmem:[%s937_s5 + $0xf0] sm:$0xff]  ;;  %v234_v48 = vld [vmem:[%s937_s5 + $0x108] sm:$0xff]  ;;  %v236_v49 = vld [vmem:[%s937_s5 + $0x118] sm:$0xff]  ;;  %p677_p7 = pnand %p676_p3, %p670_p13 }
  0x66   : > { %480 = vmatpush1.bf16.msra.mxu0 %v479_v19  ;;  %v499_v50 = vpack.c.bf16 %v231_v47, %v229_v46  ;;  %v501_v51 = vpack.c.bf16 %v236_v49, %v234_v48  ;;  %v233_v52 = vld [vmem:[%s937_s5 + $0x100] sm:$0xff]  ;;  %v235_v53 = vld [vmem:[%s937_s5 + $0x110] sm:$0xff]  ;;  %v238_v54 = vld [vmem:[%s937_s5 + $0x128] sm:$0xff] }
  0x67   : > { %482 = vmatprep.subr.bf16.mxu0 %v481_v20  ;;  %v240_v55 = vld [vmem:[%s937_s5 + $0x138] sm:$0xff]  ;;  %v503_v56 = vpack.c.bf16 %v235_v53, %v233_v52  ;;  %v237_v58 = vld [vmem:[%s937_s5 + $0x120] sm:$0xff]  ;;  %v239_v59 = vld [vmem:[%s937_s5 + $0x130] sm:$0xff] }
  0x68   : > { %v505_v57 = vpack.c.bf16 %v240_v55, %v238_v54  ;;  %v242_v60 = vld [vmem:[%s937_s5 + $0x148] sm:$0xff]  ;;  %v244_v61 = vld [vmem:[%s937_s5 + $0x158] sm:$0xff]  ;;  %v507_v62 = vpack.c.bf16 %v239_v59, %v237_v58  ;;  %v241_v0 = vld [vmem:[%s937_s5 + $0x140] sm:$0xff] }
  0x69   : > { %v509_v63 = vpack.c.bf16 %v244_v61, %v242_v60  ;;  %v243_v1 = vld [vmem:[%s937_s5 + $0x150] sm:$0xff]  ;;  %v246_v2 = vld [vmem:[%s937_s5 + $0x168] sm:$0xff]  ;;  %v248_v3 = vld [vmem:[%s937_s5 + $0x178] sm:$0xff] }
  0x6a   : > { %484 = vmatpush1.bf16.msra.mxu0 %v483_v25  ;;  %v511_v4 = vpack.c.bf16 %v243_v1, %v241_v0  ;;  %v513_v5 = vpack.c.bf16 %v248_v3, %v246_v2  ;;  %v245_v6 = vld [vmem:[%s937_s5 + $0x160] sm:$0xff]  ;;  %v247_v7 = vld [vmem:[%s937_s5 + $0x170] sm:$0xff]  ;;  %v250_v8 = vld [vmem:[%s937_s5 + $0x188] sm:$0xff] }
  0x6b   : > { %486 = vmatprep.subr.bf16.mxu0 %v485_v26  ;;  %v252_v9 = vld [vmem:[%s937_s5 + $0x198] sm:$0xff]  ;;  %v515_v10 = vpack.c.bf16 %v247_v7, %v245_v6  ;;  %v249_v12 = vld [vmem:[%s937_s5 + $0x180] sm:$0xff]  ;;  %v251_v13 = vld [vmem:[%s937_s5 + $0x190] sm:$0xff] }
  0x6c   : > { %v517_v11 = vpack.c.bf16 %v252_v9, %v250_v8  ;;  %v254_v14 = vld [vmem:[%s937_s5 + $0x1a8] sm:$0xff]  ;;  %v256_v15 = vld [vmem:[%s937_s5 + $0x1b8] sm:$0xff]  ;;  %v519_v16 = vpack.c.bf16 %v251_v13, %v249_v12  ;;  %v253_v18 = vld [vmem:[%s937_s5 + $0x1a0] sm:$0xff] }
  0x6d   : > { %v521_v17 = vpack.c.bf16 %v256_v15, %v254_v14  ;;  %v255_v19 = vld [vmem:[%s937_s5 + $0x1b0] sm:$0xff]  ;;  %v258_v20 = vld [vmem:[%s937_s5 + $0x1c8] sm:$0xff]  ;;  %v260_v21 = vld [vmem:[%s937_s5 + $0x1d8] sm:$0xff] }
  0x6e   : > { %488 = vmatpush1.bf16.msra.mxu0 %v487_v31  ;;  %v523_v22 = vpack.c.bf16 %v255_v19, %v253_v18  ;;  %v525_v23 = vpack.c.bf16 %v260_v21, %v258_v20  ;;  %v257_v24 = vld [vmem:[%s937_s5 + $0x1c0] sm:$0xff]  ;;  %v259_v25 = vld [vmem:[%s937_s5 + $0x1d0] sm:$0xff]  ;;  %v262_v26 = vld [vmem:[%s937_s5 + $0x1e8] sm:$0xff] }
  0x6f   : > { %490 = vmatprep.subr.bf16.mxu0 %v489_v32  ;;  %v264_v27 = vld [vmem:[%s937_s5 + $0x1f8] sm:$0xff]  ;;  %v527_v28 = vpack.c.bf16 %v259_v25, %v257_v24  ;;  %v261_v30 = vld [vmem:[%s937_s5 + $0x1e0] sm:$0xff]  ;;  %v263_v31 = vld [vmem:[%s937_s5 + $0x1f0] sm:$0xff] }
  0x70   : > { %v529_v29 = vpack.c.bf16 %v264_v27, %v262_v26  ;;  %v531_v32 = vpack.c.bf16 %v263_v31, %v261_v30  ;;  %v199_v33 = vld [vmem:[#allocation2] sm:$0xff] }
  0x72   : > { %492 = vmatpush1.bf16.msra.mxu0 %v491_v37 }
  0x73   : > { %494 = vmatprep.subr.bf16.mxu0 %v493_v38 }
  0x76   : > { %496 = vmatpush1.bf16.msra.mxu0 %v495_v44 }
  0x77   : > { %498 = vmatprep.subr.bf16.mxu0 %v497_v45 }
  0x7a   : > { %500 = vmatpush1.bf16.msra.mxu0 %v499_v50 }
  0x7b   : > { %502 = vmatprep.subr.bf16.mxu0 %v501_v51 }
  0x7e   : > { %504 = vmatpush1.bf16.msra.mxu0 %v503_v56 }
  0x7f   : > { %506 = vmatprep.subr.bf16.mxu0 %v505_v57 }
  0x82   : > { %508 = vmatpush1.bf16.msra.mxu0 %v507_v62 }
  0x83   : > { %510 = vmatprep.subr.bf16.mxu0 %v509_v63 }
  0x86   : > { %512 = vmatpush1.bf16.msra.mxu0 %v511_v4 }
  0x87   : > { %514 = vmatprep.subr.bf16.mxu0 %v513_v5 }
  0x8a   : > { %516 = vmatpush1.bf16.msra.mxu0 %v515_v10 }
  0x8b   : > { %518 = vmatprep.subr.bf16.mxu0 %v517_v11 }
  0x8e   : > { %520 = vmatpush1.bf16.msra.mxu0 %v519_v16 }
  0x8f   : > { %522 = vmatprep.subr.bf16.mxu0 %v521_v17 }
  0x92   : > { %524 = vmatpush1.bf16.msra.mxu0 %v523_v22 }
  0x93   : > { %526 = vmatprep.subr.bf16.mxu0 %v525_v23 }
  0x96   : > { %528 = vmatpush1.bf16.msra.mxu0 %v527_v28 }
  0x97   : > { %530 = vmatprep.subr.bf16.mxu0 %v529_v29 }
  0x9a   : > { %532 = vmatpush1.bf16.msra.mxu0 %v531_v32 }
  0x9d   : > { %330 = vmatmul.mubr.f32.vlgmr.msra.gmra.mrb[0].mxu0 %v199_v33 }
 0x170   : > { %v331_v34 = vpop.f32.mrb[0].mxu0 }
 0x171   : > { %336 = vst [vmem:[%s196_s20] sm:$0xff] %v331_v34  ;;  %v333_v35 = vpop.f32.mrb[1].mxu0 }
 0x172   : > { %337 = vst [vmem:[%s196_s20 + $0x8] sm:$0xff] %v333_v35 }
 0x173   : > { %680 = shalt.err (!%p677_p7)
}
 0x174   : > { %s681_s8 = scalar_lea.hbm %s1014_s29, 256  ;;  %s685_s24 = scalar_lea.hbm %s1062_s2, 1024 }
 0x175   : > { %p682_p1 = scmp.ne.s32.totalorder %s1014_s29, %s681_s8  ;;  %p686_p12 = scmp.lt.u32.totalorder %s1014_s29, %s1062_s2 }
 0x176   : > { %p687_p2 = scmp.lt.u32.totalorder %s685_s24, %s681_s8  ;;  %p689_p6 = scmp.lt.u32.totalorder %s681_s8, %s1014_s29 }
 0x177   : > { %p683_p4 = pnand %p682_p1, %p1083_p10 }
 0x178   : > { %p688_p8 = por %p687_p2, %p686_p12 }
 0x179   : > { %p684_p5 = pneg %p683_p4 }
 0x17a   : > { %p690_p11 = por %p689_p6, %p688_p8 }
 0x17c   : > { %p691_p13 = pnand %p690_p11, %p684_p5 }
 0x17e   : > { %694 = shalt.err (!%p691_p13)
}
 0x17f   : > { %539 = dma.vmem_to_hbm [thread:$0]  (%p1083_p10), %s1009_s23, 256, %s1014_s29, %s339_s17  }
 0x180 PF: > { %p556_p0 = scmp.ge.s32.totalorder %s753_s14, 2  ;;  %s367_s5 = sand.u32 1, %s733_s9  }
 0x181   : > { %p1084_p9 = scmp.ne.s32.totalorder %s1073_s22, 0  ;;  %s368_s18 = scalar_lea.sflag [#allocation4], %s367_s5 }
 0x183   : > { %p550_p3 = pnand %p556_p0, %p1084_p9 }
 0x185   : > { %728 = dma.done.wait (!%p550_p3), %s368_s18, 256  }
 0x186   : > { %730 = vsyncadd (!%p550_p3), %s368_s18, 4294967040  ;;  %s19_s14 = sadd.s32 1, %s753_s14   ;;  %s1085_s9 = smov %s737_s10 }
 0x187   : > { %p16_p7 = scmp.ge.s32.totalorder %s19_s14, 6   ;;  %s1086_s10 = smov %s741_s11 }
 0x188   : > { %s1087_s11 = smov %s894_s25  ;;  %s1088_s12 = smov %s749_s13 }
 0x189   : > { %s1089_s13 = smov %s1091_s28  ;;  %18 = sbr.rel (!%p16_p7) target bundleno = 7 (0x7), region = 79 }
 0x190   :  { %373 = vsyncpa [#allocation3], 1 }
 0x191   :  { %375 = vsyncpa [#allocation3 + $0x1], 1 }
 0x192   :  { %376 = vsyncpa [#allocation6], 1 }
 0x193   :  { %378 = vsyncpa [#allocation6 + $0x1], 1 }
 0x194   :  { %379 = vsyncpa [#allocation4], 1 }
 0x195   :  { %381 = vsyncpa [#allocation4 + $0x1], 1 }

</bundles_post_ra>
